<compile_context>
chip_gen: v5e
topology: v5e:2x2
jax: 0.10.0
libtpu: 0.0.40
codegen_flags: <defaults>
</compile_context>

<pallas_src>
import random

import jax
import jax.numpy as jnp
from jax.experimental import pallas as pl
from jax.experimental.pallas import tpu as pltpu


def dynamic_net_kernel(n_mid_ref,                      # SMEM: (1,) int32
                       x_ref,                          # VMEM: (N, D_in)
                       w_in_ref, b_in_ref,             # VMEM: (D_in, H), (1, H)
                       w_mid_ref, b_mid_ref,           # VMEM: (H, H),    (1, H)
                       w_out_ref, b_out_ref,           # VMEM: (H, D_out),(1, D_out)
                       o_ref,                          # VMEM: (N, D_out)
                       h_ref):                         # VMEM scratch: (N, H) f32
    # ---- input layer + ReLU ----
    h = jnp.dot(x_ref[...], w_in_ref[...], preferred_element_type=jnp.float32)
    h_ref[...] = jnp.maximum(h + b_in_ref[...], 0.0)

    # ---- 0..3 reuses of the middle layer, gated by the runtime scalar ----
    n_mid = n_mid_ref[0]
    for i in range(3):  # statically unrolled; each copy guarded at runtime
        @pl.when(i < n_mid)
        def _():
            hm = jnp.dot(h_ref[...], w_mid_ref[...],
                         preferred_element_type=jnp.float32)
            h_ref[...] = jnp.maximum(hm + b_mid_ref[...], 0.0)

    # ---- output layer (no ReLU) ----
    y = jnp.dot(h_ref[...], w_out_ref[...], preferred_element_type=jnp.float32)
    o_ref[...] = (y + b_out_ref[...]).astype(o_ref.dtype)


def _fused_forward(n_mid_arr, x, w_in, b_in, w_mid, b_mid, w_out, b_out):
    n, _ = x.shape
    h_dim = w_in.shape[1]
    d_out = w_out.shape[1]

    smem = pl.BlockSpec(memory_space=pltpu.MemorySpace.SMEM)
    vmem = pl.BlockSpec(memory_space=pltpu.MemorySpace.VMEM)

    return pl.pallas_call(
        dynamic_net_kernel,
        out_shape=jax.ShapeDtypeStruct((n, d_out), jnp.float32),
        in_specs=[smem, vmem, vmem, vmem, vmem, vmem, vmem, vmem],
        out_specs=vmem,
        scratch_shapes=[pltpu.VMEM((n, h_dim), jnp.float32)],
    )(
        n_mid_arr,
        x,
        w_in, b_in.reshape(1, h_dim),
        w_mid, b_mid.reshape(1, h_dim),
        w_out, b_out.reshape(1, d_out),
    )


_fused_forward_jit = jax.jit(_fused_forward)


def dynamic_net_forward(x, params, n_middle):
    """Forward pass of DynamicNet, fully fused into one Pallas kernel.

    h = relu(x @ W_in + b_in)
    repeat n_middle (0..3) times: h = relu(h @ W_mid + b_mid)
    y = h @ W_out + b_out
    """
    (w_in, b_in), (w_mid, b_mid), (w_out, b_out) = params
    n_mid_arr = jnp.asarray([n_middle], dtype=jnp.int32)
    return _fused_forward_jit(n_mid_arr, x, w_in, b_in, w_mid, b_mid,
                              w_out, b_out)


def init_linear_params(key, d_in, d_out):
    """Mimic torch.nn.Linear default init: U(-1/sqrt(d_in), 1/sqrt(d_in)).

    Returns weight already transposed to (d_in, d_out)."""
    kw, kb = jax.random.split(key)
    bound = 1.0 / jnp.sqrt(jnp.float32(d_in))
    w = jax.random.uniform(kw, (d_in, d_out), jnp.float32, -bound, bound)
    b = jax.random.uniform(kb, (d_out,), jnp.float32, -bound, bound)
    return w, b


if __name__ == "__main__":
    # Small shapes consistent with the module: batch N, D_in, H, D_out.
    N, D_in, H, D_out = 8, 32, 32, 16

    key = jax.random.PRNGKey(0)
    k_x, k_in, k_mid, k_out = jax.random.split(key, 4)

    x = jax.random.normal(k_x, (N, D_in), jnp.float32)

    params = (
        init_linear_params(k_in, D_in, H),
        init_linear_params(k_mid, H, H),
        init_linear_params(k_out, H, D_out),
    )

    # The PyTorch module picks random.randint(0, 3) middle-layer repeats per
    # forward pass; reproduce that with a deterministic Python seed. The fused
    # kernel takes it as a runtime scalar, so all 4 values share one compile.
    random.seed(0)
    n_middle = random.randint(0, 3)

    y = dynamic_net_forward(x, params, n_middle)
    jax.block_until_ready(y)

    # Check every possible n_middle against a pure-JAX reference (single
    # compilation exercised for all of them).
    (w_in, b_in), (w_mid, b_mid), (w_out, b_out) = params
    for nm in range(4):
        y_k = dynamic_net_forward(x, params, nm)
        h_ref = jnp.maximum(x @ w_in + b_in, 0.0)
        for _ in range(nm):
            h_ref = jnp.maximum(h_ref @ w_mid + b_mid, 0.0)
        y_ref = h_ref @ w_out + b_out
        assert jnp.allclose(y_k, y_ref, atol=1e-5, rtol=1e-5), (
            f"mismatch vs reference for n_middle={nm}")

    print("KERNEL_OK")
</pallas_src>

<mosaic_0001>
module attributes {stable_mosaic.version = 11 : i64} {
  func.func @dynamic_net_kernel(%arg0: memref<1xi32, #tpu.memory_space<smem>>, %arg1: memref<8x32xf32, #tpu.memory_space<vmem>>, %arg2: memref<32x32xf32, #tpu.memory_space<vmem>>, %arg3: memref<1x32xf32, #tpu.memory_space<vmem>>, %arg4: memref<32x32xf32, #tpu.memory_space<vmem>>, %arg5: memref<1x32xf32, #tpu.memory_space<vmem>>, %arg6: memref<32x16xf32, #tpu.memory_space<vmem>>, %arg7: memref<1x16xf32, #tpu.memory_space<vmem>>, %arg8: memref<8x16xf32, #tpu.memory_space<vmem>>, %arg9: memref<8x32xf32, #tpu.memory_space<vmem>>) attributes {dimension_semantics = [], scalar_prefetch = 0 : i64, scratch_operands = 1 : i64, tpu.core_type = #tpu.core_type<tc>} {
    %c0 = arith.constant 0 : index
    %c0_0 = arith.constant 0 : index
    %0 = vector.load %arg1[%c0, %c0_0] : memref<8x32xf32, #tpu.memory_space<vmem>>, vector<8x32xf32>
    %c0_1 = arith.constant 0 : index
    %c0_2 = arith.constant 0 : index
    %1 = vector.load %arg2[%c0_1, %c0_2] : memref<32x32xf32, #tpu.memory_space<vmem>>, vector<32x32xf32>
    %cst = arith.constant dense<0.000000e+00> : vector<8x32xf32>
    %2 = tpu.matmul %0, %1, %cst {dimension_numbers = #tpu.dot_dimension_numbers<[1], [0], [0], [1], [0, 0, 1, 1], [], []>} : vector<8x32xf32>, vector<32x32xf32>, vector<8x32xf32> -> vector<8x32xf32>
    %c0_3 = arith.constant 0 : index
    %c0_4 = arith.constant 0 : index
    %3 = vector.load %arg3[%c0_3, %c0_4] : memref<1x32xf32, #tpu.memory_space<vmem>>, vector<1x32xf32>
    %4 = vector.broadcast %3 : vector<1x32xf32> to vector<8x32xf32>
    %5 = arith.addf %2, %4 : vector<8x32xf32>
    %cst_5 = arith.constant 0.000000e+00 : f32
    %6 = vector.broadcast %cst_5 : f32 to vector<8x32xf32>
    %7 = arith.maximumf %5, %6 : vector<8x32xf32>
    %c0_6 = arith.constant 0 : index
    %c0_7 = arith.constant 0 : index
    %8 = vector.load %arg9[%c0_6, %c0_7] : memref<8x32xf32, #tpu.memory_space<vmem>>, vector<8x32xf32>
    tpu.vector_store %arg9[%c0_6, %c0_7], %7 {strides = array<i32>} : memref<8x32xf32, #tpu.memory_space<vmem>>, vector<8x32xf32>,
    %c0_8 = arith.constant 0 : index
    %9 = memref.load %arg0[%c0_8] : memref<1xi32, #tpu.memory_space<smem>>
    %c0_i32 = arith.constant 0 : i32
    %10 = arith.cmpi sgt, %9, %c0_i32 : i32
    %11 = arith.extui %10 : i1 to i32
    %c0_i32_9 = arith.constant 0 : i32
    %12 = arith.cmpi ne, %11, %c0_i32_9 : i32
    scf.if %12 {
      %c0_21 = arith.constant 0 : index
      %c0_22 = arith.constant 0 : index
      %26 = vector.load %arg9[%c0_21, %c0_22] : memref<8x32xf32, #tpu.memory_space<vmem>>, vector<8x32xf32>
      %c0_23 = arith.constant 0 : index
      %c0_24 = arith.constant 0 : index
      %27 = vector.load %arg4[%c0_23, %c0_24] : memref<32x32xf32, #tpu.memory_space<vmem>>, vector<32x32xf32>
      %cst_25 = arith.constant dense<0.000000e+00> : vector<8x32xf32>
      %28 = tpu.matmul %26, %27, %cst_25 {dimension_numbers = #tpu.dot_dimension_numbers<[1], [0], [0], [1], [0, 0, 1, 1], [], []>} : vector<8x32xf32>, vector<32x32xf32>, vector<8x32xf32> -> vector<8x32xf32>
      %c0_26 = arith.constant 0 : index
      %c0_27 = arith.constant 0 : index
      %29 = vector.load %arg5[%c0_26, %c0_27] : memref<1x32xf32, #tpu.memory_space<vmem>>, vector<1x32xf32>
      %30 = vector.broadcast %29 : vector<1x32xf32> to vector<8x32xf32>
      %31 = arith.addf %28, %30 : vector<8x32xf32>
      %cst_28 = arith.constant 0.000000e+00 : f32
      %32 = vector.broadcast %cst_28 : f32 to vector<8x32xf32>
      %33 = arith.maximumf %31, %32 : vector<8x32xf32>
      %c0_29 = arith.constant 0 : index
      %c0_30 = arith.constant 0 : index
      %34 = vector.load %arg9[%c0_29, %c0_30] : memref<8x32xf32, #tpu.memory_space<vmem>>, vector<8x32xf32>
      tpu.vector_store %arg9[%c0_29, %c0_30], %33 {strides = array<i32>} : memref<8x32xf32, #tpu.memory_space<vmem>>, vector<8x32xf32>,
    } else {
    }
    %c1_i32 = arith.constant 1 : i32
    %13 = arith.cmpi sgt, %9, %c1_i32 : i32
    %14 = arith.extui %13 : i1 to i32
    %c0_i32_10 = arith.constant 0 : i32
    %15 = arith.cmpi ne, %14, %c0_i32_10 : i32
    scf.if %15 {
      %c0_21 = arith.constant 0 : index
      %c0_22 = arith.constant 0 : index
      %26 = vector.load %arg9[%c0_21, %c0_22] : memref<8x32xf32, #tpu.memory_space<vmem>>, vector<8x32xf32>
      %c0_23 = arith.constant 0 : index
      %c0_24 = arith.constant 0 : index
      %27 = vector.load %arg4[%c0_23, %c0_24] : memref<32x32xf32, #tpu.memory_space<vmem>>, vector<32x32xf32>
      %cst_25 = arith.constant dense<0.000000e+00> : vector<8x32xf32>
      %28 = tpu.matmul %26, %27, %cst_25 {dimension_numbers = #tpu.dot_dimension_numbers<[1], [0], [0], [1], [0, 0, 1, 1], [], []>} : vector<8x32xf32>, vector<32x32xf32>, vector<8x32xf32> -> vector<8x32xf32>
      %c0_26 = arith.constant 0 : index
      %c0_27 = arith.constant 0 : index
      %29 = vector.load %arg5[%c0_26, %c0_27] : memref<1x32xf32, #tpu.memory_space<vmem>>, vector<1x32xf32>
      %30 = vector.broadcast %29 : vector<1x32xf32> to vector<8x32xf32>
      %31 = arith.addf %28, %30 : vector<8x32xf32>
      %cst_28 = arith.constant 0.000000e+00 : f32
      %32 = vector.broadcast %cst_28 : f32 to vector<8x32xf32>
      %33 = arith.maximumf %31, %32 : vector<8x32xf32>
      %c0_29 = arith.constant 0 : index
      %c0_30 = arith.constant 0 : index
      %34 = vector.load %arg9[%c0_29, %c0_30] : memref<8x32xf32, #tpu.memory_space<vmem>>, vector<8x32xf32>
      tpu.vector_store %arg9[%c0_29, %c0_30], %33 {strides = array<i32>} : memref<8x32xf32, #tpu.memory_space<vmem>>, vector<8x32xf32>,
    } else {
    }
    %c2_i32 = arith.constant 2 : i32
    %16 = arith.cmpi sgt, %9, %c2_i32 : i32
    %17 = arith.extui %16 : i1 to i32
    %c0_i32_11 = arith.constant 0 : i32
    %18 = arith.cmpi ne, %17, %c0_i32_11 : i32
    scf.if %18 {
      %c0_21 = arith.constant 0 : index
      %c0_22 = arith.constant 0 : index
      %26 = vector.load %arg9[%c0_21, %c0_22] : memref<8x32xf32, #tpu.memory_space<vmem>>, vector<8x32xf32>
      %c0_23 = arith.constant 0 : index
      %c0_24 = arith.constant 0 : index
      %27 = vector.load %arg4[%c0_23, %c0_24] : memref<32x32xf32, #tpu.memory_space<vmem>>, vector<32x32xf32>
      %cst_25 = arith.constant dense<0.000000e+00> : vector<8x32xf32>
      %28 = tpu.matmul %26, %27, %cst_25 {dimension_numbers = #tpu.dot_dimension_numbers<[1], [0], [0], [1], [0, 0, 1, 1], [], []>} : vector<8x32xf32>, vector<32x32xf32>, vector<8x32xf32> -> vector<8x32xf32>
      %c0_26 = arith.constant 0 : index
      %c0_27 = arith.constant 0 : index
      %29 = vector.load %arg5[%c0_26, %c0_27] : memref<1x32xf32, #tpu.memory_space<vmem>>, vector<1x32xf32>
      %30 = vector.broadcast %29 : vector<1x32xf32> to vector<8x32xf32>
      %31 = arith.addf %28, %30 : vector<8x32xf32>
      %cst_28 = arith.constant 0.000000e+00 : f32
      %32 = vector.broadcast %cst_28 : f32 to vector<8x32xf32>
      %33 = arith.maximumf %31, %32 : vector<8x32xf32>
      %c0_29 = arith.constant 0 : index
      %c0_30 = arith.constant 0 : index
      %34 = vector.load %arg9[%c0_29, %c0_30] : memref<8x32xf32, #tpu.memory_space<vmem>>, vector<8x32xf32>
      tpu.vector_store %arg9[%c0_29, %c0_30], %33 {strides = array<i32>} : memref<8x32xf32, #tpu.memory_space<vmem>>, vector<8x32xf32>,
    } else {
    }
    %c0_12 = arith.constant 0 : index
    %c0_13 = arith.constant 0 : index
    %19 = vector.load %arg9[%c0_12, %c0_13] : memref<8x32xf32, #tpu.memory_space<vmem>>, vector<8x32xf32>
    %c0_14 = arith.constant 0 : index
    %c0_15 = arith.constant 0 : index
    %20 = vector.load %arg6[%c0_14, %c0_15] : memref<32x16xf32, #tpu.memory_space<vmem>>, vector<32x16xf32>
    %cst_16 = arith.constant dense<0.000000e+00> : vector<8x16xf32>
    %21 = tpu.matmul %19, %20, %cst_16 {dimension_numbers = #tpu.dot_dimension_numbers<[1], [0], [0], [1], [0, 0, 1, 1], [], []>} : vector<8x32xf32>, vector<32x16xf32>, vector<8x16xf32> -> vector<8x16xf32>
    %c0_17 = arith.constant 0 : index
    %c0_18 = arith.constant 0 : index
    %22 = vector.load %arg7[%c0_17, %c0_18] : memref<1x16xf32, #tpu.memory_space<vmem>>, vector<1x16xf32>
    %23 = vector.broadcast %22 : vector<1x16xf32> to vector<8x16xf32>
    %24 = arith.addf %21, %23 : vector<8x16xf32>
    %c0_19 = arith.constant 0 : index
    %c0_20 = arith.constant 0 : index
    %25 = vector.load %arg8[%c0_19, %c0_20] : memref<8x16xf32, #tpu.memory_space<vmem>>, vector<8x16xf32>
    tpu.vector_store %arg8[%c0_19, %c0_20], %24 {strides = array<i32>} : memref<8x16xf32, #tpu.memory_space<vmem>>, vector<8x16xf32>,
    return
  }
}

</mosaic_0001>

<bundles_post_ra>
// kernel: _fused_forward.1
= control target key start
LH: loop header
LB: loop body
LE: loop exit
PB: predicated region body
PF: predicated region fallthrough
CT: control target
= control target key end

     0   :  { %14 = vsyncpa [#allocation5], 0  ;;  %s432_s0 = inlined_call_operand.<no memory space> [shape: s32[1], index: 0, kind: input, shape index: {}]   ;;  %s433_s1 = inlined_call_operand.vmem [shape: f32[8,32], index: 1, kind: input, shape index: {}]   ;;  %s434_s2 = inlined_call_operand.vmem [shape: f32[32,32], index: 2, kind: input, shape index: {}]   ;;  %s435_s3 = inlined_call_operand.vmem [shape: f32[1,32], index: 3, kind: input, shape index: {}]   ;;  %s436_s4 = inlined_call_operand.hbm [shape: f32[32,32], index: 4, kind: input, shape index: {}]   ;;  %s437_s5 = inlined_call_operand.vmem [shape: f32[1,32], index: 5, kind: input, shape index: {}]   ;;  %s438_s6 = inlined_call_operand.vmem [shape: f32[32,16], index: 6, kind: input, shape index: {}]   ;;  %s439_s7 = inlined_call_operand.vmem [shape: f32[1,16], index: 7, kind: input, shape index: {}]   ;;  %s440_s8 = inlined_call_operand.hbm [shape: f32[8,16], index: 8, kind: output, shape index: {}]  }
   0x1   :  { %15 = vsyncpa [#allocation6], 0  ;;  %s28_s29 = sshll.u32 %s436_s4, 4  ;;  %s317_s30 = smov [#allocation4]   ;;  %s29_s29 = int_to_ptr.hbm [resolvable:$true] %s28_s29 }
   0x2   :  { %s30_s9 = sshll.u32 %s317_s30, 4  ;;  %s318_s10 = smov 128   ;;  %s31_s9 = int_to_ptr.vmem [resolvable:$true] %s30_s9 }
   0x3   :  { %s319_s11 = smov 8  }
   0x4   :  { %36 = dma.hbm_to_vmem [thread:$0]  %s29_s29, 512, %s31_s9, [#allocation5], %s318_s10, %s318_s10, %s319_s11  }
   0x5   :  { %313 = dma.done.wait [#allocation5], 512  }
   0x6   :  { %314 = vsyncadd [#allocation5], 4294966784  ;;  %v51_v0 = vld [vmem:[%s434_s2 + $0x18] sm:$0xff]  ;;  %v50_v1 = vld [vmem:[%s434_s2 + $0x10] sm:$0xff]  ;;  %vm56_vm0 = vcmask 261120   ;;  %p249_p0 = scmp.le.s32.totalorder %s432_s0, 0 }
   0x7   :  { %72 = vmatpush.msra.mxu0 %v51_v0  ;;  %v49_v2 = vld [vmem:[%s434_s2 + $0x8] sm:$0xff]  ;;  %v48_v3 = vld [vmem:[%s434_s2] sm:$0xff] }
   0x8   :  { %v47_v4 = vld [vmem:[%s433_s1] sm:$0xff] }
   0x9   :  { %73 = vmatpush.msra.mxu0 %v50_v1  ;;  %v260_v5 = vld [vmem:[%s435_s3] ss:$0 sm:$0xff] }
   0xb   :  { %74 = vmatpush.msra.mxu0 %v49_v2 }
   0xd   :  { %75 = vmatpush.msra.mxu0 %v48_v3 }
   0xe   :  { %248 = vmatmul.msk.f32.vlgmr.msra.gmra.mxu0 %vm56_vm0, %v47_v4 }
  0x8b   :  { %v77_v6 = vpop.f32.mrf.mxu0 }
  0x8c   :  { %v78_v7 = vadd.f32 %v260_v5, %v77_v6  ;;  %86 = sbr.rel (%p249_p0) target bundleno = 284 (0x11c), region = 41 }
  0x8e   :  { %v80_v8 = vmax.f32 %v78_v7, 0.0 }
  0x90   :  { %81 = vst.msk [vmem:[#allocation2] sm:$0xff] %vm56_vm0, %v80_v8 }
  0x91   :  { %v91_v9 = vld [vmem:[#allocation4 + $0x18] sm:$0xff]  ;;  %v90_v10 = vld [vmem:[#allocation4 + $0x10] sm:$0xff]  ;;  %v89_v11 = vld [vmem:[#allocation4 + $0x8] sm:$0xff] }
  0x92   :  { %111 = vmatpush.msra.mxu0 %v91_v9  ;;  %v88_v12 = vld [vmem:[#allocation4] sm:$0xff]  ;;  %v261_v14 = vld [vmem:[%s437_s5] ss:$0 sm:$0xff] }
  0x94   :  { %112 = vmatpush.msra.mxu0 %v90_v10 }
  0x96   :  { %113 = vmatpush.msra.mxu0 %v89_v11 }
  0x97   :  { %v87_v13 = vld [vmem:[#allocation2] sm:$0xff] }
  0x98   :  { %114 = vmatpush.msra.mxu0 %v88_v12 }
  0x99   :  { %250 = vmatmul.msk.f32.vlgmr.msra.gmra.mxu0 %vm56_vm0, %v87_v13 }
 0x116   :  { %v116_v15 = vpop.f32.mrf.mxu0 }
 0x117   :  { %v117_v16 = vadd.f32 %v261_v14, %v116_v15 }
 0x119   :  { %v119_v17 = vmax.f32 %v117_v16, 0.0 }
 0x11b   :  { %120 = vst.msk [vmem:[#allocation2] sm:$0xff] %vm56_vm0, %v119_v17 }
 0x11c PF:  { %p251_p1 = scmp.le.s32.totalorder %s432_s0, 1 }
 0x11e   :  { %124 = sbr.rel (%p251_p1) target bundleno = 430 (0x1ae), region = 45 }
 0x123   :  { %v129_v18 = vld [vmem:[#allocation4 + $0x18] sm:$0xff]  ;;  %v128_v19 = vld [vmem:[#allocation4 + $0x10] sm:$0xff]  ;;  %v127_v20 = vld [vmem:[#allocation4 + $0x8] sm:$0xff] }
 0x124   :  { %149 = vmatpush.msra.mxu0 %v129_v18  ;;  %v126_v21 = vld [vmem:[#allocation4] sm:$0xff]  ;;  %v125_v22 = vld [vmem:[#allocation2] sm:$0xff] }
 0x125   :  { %v262_v23 = vld [vmem:[%s437_s5] ss:$0 sm:$0xff] }
 0x126   :  { %150 = vmatpush.msra.mxu0 %v128_v19 }
 0x128   :  { %151 = vmatpush.msra.mxu0 %v127_v20 }
 0x12a   :  { %152 = vmatpush.msra.mxu0 %v126_v21 }
 0x12b   :  { %252 = vmatmul.msk.f32.vlgmr.msra.gmra.mxu0 %vm56_vm0, %v125_v22 }
 0x1a8   :  { %v154_v24 = vpop.f32.mrf.mxu0 }
 0x1a9   :  { %v155_v25 = vadd.f32 %v262_v23, %v154_v24 }
 0x1ab   :  { %v157_v26 = vmax.f32 %v155_v25, 0.0 }
 0x1ad   :  { %158 = vst.msk [vmem:[#allocation2] sm:$0xff] %vm56_vm0, %v157_v26 }
 0x1ae PF:  { %p253_p2 = scmp.le.s32.totalorder %s432_s0, 2 }
 0x1b0   :  { %162 = sbr.rel (%p253_p2) target bundleno = 576 (0x240), region = 49 }
 0x1b5   :  { %v167_v27 = vld [vmem:[#allocation4 + $0x18] sm:$0xff]  ;;  %v166_v28 = vld [vmem:[#allocation4 + $0x10] sm:$0xff]  ;;  %v165_v29 = vld [vmem:[#allocation4 + $0x8] sm:$0xff] }
 0x1b6   :  { %187 = vmatpush.msra.mxu0 %v167_v27  ;;  %v164_v30 = vld [vmem:[#allocation4] sm:$0xff]  ;;  %v163_v31 = vld [vmem:[#allocation2] sm:$0xff] }
 0x1b7   :  { %v263_v32 = vld [vmem:[%s437_s5] ss:$0 sm:$0xff] }
 0x1b8   :  { %188 = vmatpush.msra.mxu0 %v166_v28 }
 0x1ba   :  { %189 = vmatpush.msra.mxu0 %v165_v29 }
 0x1bc   :  { %190 = vmatpush.msra.mxu0 %v164_v30 }
 0x1bd   :  { %254 = vmatmul.msk.f32.vlgmr.msra.gmra.mxu0 %vm56_vm0, %v163_v31 }
 0x23a   :  { %v192_v33 = vpop.f32.mrf.mxu0 }
 0x23b   :  { %v193_v34 = vadd.f32 %v263_v32, %v192_v33 }
 0x23d   :  { %v195_v35 = vmax.f32 %v193_v34, 0.0 }
 0x23f   :  { %196 = vst.msk [vmem:[#allocation2] sm:$0xff] %vm56_vm0, %v195_v35 }
 0x240 PF:  { %v201_v36 = vld [vmem:[%s438_s6 + $0x18] sm:$0xff]  ;;  %v200_v37 = vld [vmem:[%s438_s6 + $0x10] sm:$0xff]  ;;  %v199_v38 = vld [vmem:[%s438_s6 + $0x8] sm:$0xff]  ;;  %s320_s17 = smov [#allocation7]   ;;  %s238_s21 = sshll.u32 %s440_s8, 4  ;;  %vm229_vm1 = vcmask 130048   ;;  %s239_s21 = int_to_ptr.hbm [resolvable:$true] %s238_s21 }
 0x241   :  { %221 = vmatpush.msra.mxu0 %v201_v36  ;;  %v198_v39 = vld [vmem:[%s438_s6] sm:$0xff]  ;;  %s236_s18 = sshll.u32 %s320_s17, 4  ;;  %s237_s18 = int_to_ptr.vmem [resolvable:$true] %s236_s18 }
 0x242   :  { %v264_v41 = vld [vmem:[%s439_s7] ss:$0 sm:$0xff] }
 0x243   :  { %222 = vmatpush.msra.mxu0 %v200_v37 }
 0x245   :  { %223 = vmatpush.msra.mxu0 %v199_v38 }
 0x246   :  { %v197_v40 = vld [vmem:[#allocation2] sm:$0xff] }
 0x247   :  { %224 = vmatpush.msra.mxu0 %v198_v39 }
 0x248   :  { %255 = vmatmul.msk.f32.vlgmr.msra.gmra.mxu0 %vm56_vm0, %v197_v40 }
 0x2c5   :  { %v226_v42 = vpop.f32.mrf.mxu0 }
 0x2c6   :  { %v227_v43 = vadd.f32 %v264_v41, %v226_v42 }
 0x2c8   :  { %230 = vst.msk [vmem:[#allocation7] sm:$0xff] %vm229_vm1, %v227_v43 }
 0x2c9   :  { %241 = dma.vmem_to_hbm [thread:$0]  %s237_s18, 128, %s239_s21, [#allocation6]  }
 0x2ca   :  { %315 = dma.done.wait [#allocation6], 128  }
 0x2cb   :  { %316 = vsyncadd [#allocation6], 4294967168 }
 0x2cc   :  { %246 = vsyncpa [#allocation5], 1 }
 0x2cd   :  { %247 = vsyncpa [#allocation6], 1 }

</bundles_post_ra>
